<compile_context>
chip_gen: v6e
topology: v6e:2x2x1
jax: 0.10.0
libtpu: 0.0.40
codegen_flags: <defaults>
</compile_context>

<pallas_src>
import functools

import jax
import jax.numpy as jnp
from jax.experimental import pallas as pl
from jax.experimental.pallas import tpu as pltpu

# ----- module configuration -----
INPUT_SIZE  = 8                            # C_in
OUTPUT_SIZE = 32
SEQLEN      = 16                           # L_in
C_OUT       = 16
KSIZE       = 3
PAD         = 1
POOL        = 2
L_CONV  = SEQLEN + 2 * PAD - (KSIZE - 1)   # 16  (stride=1, dilation=1)
L_POOL  = L_CONV // POOL                   # 8
X_LANES = SEQLEN * INPUT_SIZE              # 128 (flattened input row, lane = l*C_in + i)
P_LANES = L_POOL * C_OUT                   # 128 (flattened pooled row, lane = lp*C_out + o)


def _round_up(n, m):
    return ((n + m - 1) // m) * m


def encoder_kernel(x_ref, wcat_ref, fcw_ref, fb_ref, o_ref):
    # x_ref   : (bt, L*C_in)               f32   flattened NLC input rows
    # wcat_ref: (L*C_in, 2*L_pool*C_out)   bf16  conv-as-matmul weight, [even | odd] positions
    # fcw_ref : (L_pool*C_out, O)          bf16  fc weight permuted to pooled lane order
    # fb_ref  : (1, O)                     f32   fc bias with conv bias folded in
    # o_ref   : (bt, O)                    f32
    x = x_ref[...].astype(jnp.bfloat16)                                      # cheap VPU cast
    conv2 = jnp.dot(x, wcat_ref[...], preferred_element_type=jnp.float32)    # (bt, 256) f32
    pooled = jnp.maximum(conv2[:, :P_LANES], conv2[:, P_LANES:])             # MaxPool1d(2), VPU
    proj = jnp.dot(pooled.astype(jnp.bfloat16), fcw_ref[...],
                   preferred_element_type=jnp.float32) + fb_ref[...]         # (bt, 32)
    o_ref[...] = jnp.tanh(proj).astype(o_ref.dtype)


def _build_conv_matrix(conv_w):
    """Scatter (C_out, C_in, K) conv weight into (L*C_in, 2*L_pool*C_out).

    Column lp*C_out + o of the left half  = conv output channel o at l = 2*lp   (even l).
    Column lp*C_out + o of the right half = conv output channel o at l = 2*lp+1 (odd  l).
    Row j*C_in + i multiplies x[b, j, i]; sequence zero-padding is implicit because taps
    that would read outside [0, L) have no corresponding row.
    """
    j  = jnp.arange(SEQLEN)
    lp = jnp.arange(L_POOL)

    def half(parity):
        # conv position l = 2*lp + parity reads x[b, j, :] with tap k = j - l + PAD
        kk = j[:, None] - 2 * lp[None, :] - parity + PAD           # (L, L_pool)
        valid = (kk >= 0) & (kk < KSIZE)
        w4 = conv_w[:, :, jnp.clip(kk, 0, KSIZE - 1)]              # (C_out, C_in, L, L_pool)
        w4 = jnp.where(valid[None, None, :, :], w4, 0.0)
        w4 = jnp.transpose(w4, (2, 1, 3, 0))                       # (L, C_in, L_pool, C_out)
        return w4.reshape(SEQLEN * INPUT_SIZE, L_POOL * C_OUT)

    return jnp.concatenate([half(0), half(1)], axis=1)             # (128, 256)


def _pack_params(conv_w, conv_b, fc_w, fc_b):
    """One-time parameter repack (done eagerly, outside the per-call jit path)."""
    w_cat = _build_conv_matrix(conv_w)                                         # (128, 256) f32
    fc_w_re = jnp.transpose(fc_w.reshape(OUTPUT_SIZE, C_OUT, L_POOL),
                            (2, 1, 0)).reshape(P_LANES, OUTPUT_SIZE)           # (128, 32) f32
    cb_lane = jnp.tile(conv_b, L_POOL)                                         # lane = lp*C_out + o
    fb_eff = (fc_b + cb_lane @ fc_w_re).reshape(1, OUTPUT_SIZE)                # conv bias folded
    return (w_cat.astype(jnp.bfloat16),
            fc_w_re.astype(jnp.bfloat16),
            fb_eff.astype(jnp.float32))


def _choose_bt(B, b_tile):
    """Sublane-aligned batch tile, capped so the grid has >=2 steps when B allows (v7x 2-TC)."""
    half = _round_up(max(1, -(-B // 2)), 8)        # ceil(B/2) rounded up to a sublane multiple
    return max(8, min(b_tile, half))


def _forward(x, w_cat, fc_w_re, fb_eff, b_tile):
    B = x.shape[0]
    bt = _choose_bt(B, b_tile)
    grid_b = pl.cdiv(B, bt)                        # partial last block: OOB reads are garbage in
                                                   # unused rows, OOB output writes are masked.

    # input stays NLC; (B, L, C_in) -> (B, 128) reshape is a free row-major bitcast, no pad pass
    x2 = x.reshape(B, X_LANES)

    flops = 2 * B * (X_LANES * 2 * P_LANES + P_LANES * OUTPUT_SIZE)
    bytes_accessed = (B * X_LANES * 4 + B * OUTPUT_SIZE * 4
                      + X_LANES * 2 * P_LANES * 2 + P_LANES * OUTPUT_SIZE * 2 + OUTPUT_SIZE * 4)

    return pl.pallas_call(
        encoder_kernel,
        out_shape=jax.ShapeDtypeStruct((B, OUTPUT_SIZE), jnp.float32),
        grid=(grid_b,),
        in_specs=[
            pl.BlockSpec((bt, X_LANES), lambda b: (b, 0)),
            pl.BlockSpec((X_LANES, 2 * P_LANES), lambda b: (0, 0)),
            pl.BlockSpec((P_LANES, OUTPUT_SIZE), lambda b: (0, 0)),
            pl.BlockSpec((1, OUTPUT_SIZE), lambda b: (0, 0)),
        ],
        out_specs=pl.BlockSpec((bt, OUTPUT_SIZE), lambda b: (b, 0)),
        compiler_params=pltpu.CompilerParams(dimension_semantics=("parallel",)),
        cost_estimate=pl.CostEstimate(flops=flops,
                                      transcendentals=B * OUTPUT_SIZE,
                                      bytes_accessed=bytes_accessed),
    )(x2, w_cat, fc_w_re, fb_eff)


def make_conv1d_encoder(conv_w, conv_b, fc_w, fc_b, b_tile=2048):
    """Pack parameters once, return a jitted forward: x(B, L, C_in) f32 -> (B, O) f32."""
    w_cat, fc_w_re, fb_eff = _pack_params(conv_w, conv_b, fc_w, fc_b)
    return jax.jit(functools.partial(_forward, w_cat=w_cat, fc_w_re=fc_w_re,
                                     fb_eff=fb_eff, b_tile=b_tile))


def conv1d_encoder(x, conv_w, conv_b, fc_w, fc_b, b_tile=2048):
    """Convenience one-shot wrapper (prefer make_conv1d_encoder for repeated calls)."""
    w_cat, fc_w_re, fb_eff = _pack_params(conv_w, conv_b, fc_w, fc_b)
    return _forward(x, w_cat, fc_w_re, fb_eff, b_tile)


def reference(x, conv_w, conv_b, fc_w, fc_b):
    """Pure-JAX reference reproducing the PyTorch forward (f32, HIGHEST precision)."""
    B = x.shape[0]
    hp = jax.lax.Precision.HIGHEST
    x_ncl = jnp.transpose(x, (0, 2, 1))
    x_pad = jnp.pad(x_ncl, ((0, 0), (0, 0), (PAD, PAD)))
    conv = jnp.zeros((B, C_OUT, L_CONV), jnp.float32)
    for k in range(KSIZE):
        conv = conv + jnp.einsum('oi,bil->bol', conv_w[:, :, k],
                                 x_pad[:, :, k:k + L_CONV], precision=hp)
    conv = conv + conv_b[None, :, None]
    pooled = jnp.max(conv.reshape(B, C_OUT, L_POOL, POOL), axis=-1)
    flat = pooled.reshape(B, C_OUT * L_POOL)       # C-major flatten (== .view(B, C*L))
    return jnp.tanh(jnp.dot(flat, fc_w.T, precision=hp) + fc_b)


if __name__ == "__main__":
    key = jax.random.PRNGKey(0)
    k1, k2, k3, k4, k5 = jax.random.split(key, 5)
    # deterministic synthetic parameters (shapes follow nn.Conv1d / nn.Linear)
    conv_w = jax.random.normal(k1, (C_OUT, INPUT_SIZE, KSIZE), jnp.float32) * 0.2
    conv_b = jax.random.normal(k2, (C_OUT,), jnp.float32) * 0.1
    fc_w   = jax.random.normal(k3, (OUTPUT_SIZE, C_OUT * L_POOL), jnp.float32) * 0.1
    fc_b   = jax.random.normal(k4, (OUTPUT_SIZE,), jnp.float32) * 0.1

    encoder = make_conv1d_encoder(conv_w, conv_b, fc_w, fc_b)

    # small default case (B=2): single grid step, partial block (no host-side pad)
    B = 2
    x = jax.random.normal(k5, (B, SEQLEN, INPUT_SIZE), jnp.float32)
    out = jax.block_until_ready(encoder(x))
    ref = reference(x, conv_w, conv_b, fc_w, fc_b)
    assert out.shape == (B, OUTPUT_SIZE)
    assert jnp.allclose(out, ref, atol=2e-2, rtol=2e-2), (out, ref)

    # non-aligned batch exercising a multi-step grid + masked partial last block
    B2 = 37
    x2 = jax.random.normal(jax.random.PRNGKey(1), (B2, SEQLEN, INPUT_SIZE), jnp.float32)
    out2 = jax.block_until_ready(encoder(x2))
    ref2 = reference(x2, conv_w, conv_b, fc_w, fc_b)
    assert out2.shape == (B2, OUTPUT_SIZE)
    assert jnp.allclose(out2, ref2, atol=2e-2, rtol=2e-2), (out2, ref2)

    print("KERNEL_OK")
</pallas_src>

<mosaic_0001>
module attributes {stable_mosaic.version = 11 : i64} {
  func.func @encoder_kernel(%arg0: i32, %arg1: memref<8x128xf32, #tpu.memory_space<vmem>>, %arg2: memref<128x256xbf16, #tpu.memory_space<vmem>>, %arg3: memref<128x32xbf16, #tpu.memory_space<vmem>>, %arg4: memref<1x32xf32, #tpu.memory_space<vmem>>, %arg5: memref<8x32xf32, #tpu.memory_space<vmem>>) attributes {dimension_semantics = [#tpu.dimension_semantics<parallel>], iteration_bounds = array<i64: 1>, scalar_prefetch = 0 : i64, scratch_operands = 0 : i64, tpu.core_type = #tpu.core_type<tc>, window_params = [{transform_indices = @transform_0, window_bounds = array<i64: 8, 128>}, {pipeline_mode = #tpu.pipeline_mode<synchronous>, transform_indices = @transform_1, window_bounds = array<i64: 128, 256>}, {pipeline_mode = #tpu.pipeline_mode<synchronous>, transform_indices = @transform_2, window_bounds = array<i64: 128, 32>}, {pipeline_mode = #tpu.pipeline_mode<synchronous>, transform_indices = @transform_3, window_bounds = array<i64: 1, 32>}, {transform_indices = @transform_4, window_bounds = array<i64: 8, 32>}]} {
    %c0 = arith.constant 0 : index
    %c0_0 = arith.constant 0 : index
    %0 = vector.load %arg1[%c0, %c0_0] : memref<8x128xf32, #tpu.memory_space<vmem>>, vector<8x128xf32>
    %1 = arith.truncf %0 : vector<8x128xf32> to vector<8x128xbf16>
    %c0_1 = arith.constant 0 : index
    %c0_2 = arith.constant 0 : index
    %2 = vector.load %arg2[%c0_1, %c0_2] : memref<128x256xbf16, #tpu.memory_space<vmem>>, vector<128x256xbf16>
    %cst = arith.constant dense<0.000000e+00> : vector<8x256xf32>
    %3 = tpu.matmul %1, %2, %cst {dimension_numbers = #tpu.dot_dimension_numbers<[1], [0], [0], [1], [0, 0, 1, 1], [], []>} : vector<8x128xbf16>, vector<128x256xbf16>, vector<8x256xf32> -> vector<8x256xf32>
    %4 = vector.extract_strided_slice %3 {offsets = [0, 0], sizes = [8, 128], strides = [1, 1]} : vector<8x256xf32> to vector<8x128xf32>
    %5 = vector.extract_strided_slice %3 {offsets = [0, 128], sizes = [8, 128], strides = [1, 1]} : vector<8x256xf32> to vector<8x128xf32>
    %6 = arith.maximumf %4, %5 : vector<8x128xf32>
    %7 = arith.truncf %6 : vector<8x128xf32> to vector<8x128xbf16>
    %c0_3 = arith.constant 0 : index
    %c0_4 = arith.constant 0 : index
    %8 = vector.load %arg3[%c0_3, %c0_4] : memref<128x32xbf16, #tpu.memory_space<vmem>>, vector<128x32xbf16>
    %cst_5 = arith.constant dense<0.000000e+00> : vector<8x32xf32>
    %9 = tpu.matmul %7, %8, %cst_5 {dimension_numbers = #tpu.dot_dimension_numbers<[1], [0], [0], [1], [0, 0, 1, 1], [], []>} : vector<8x128xbf16>, vector<128x32xbf16>, vector<8x32xf32> -> vector<8x32xf32>
    %c0_6 = arith.constant 0 : index
    %c0_7 = arith.constant 0 : index
    %10 = vector.load %arg4[%c0_6, %c0_7] : memref<1x32xf32, #tpu.memory_space<vmem>>, vector<1x32xf32>
    %11 = vector.broadcast %10 : vector<1x32xf32> to vector<8x32xf32>
    %12 = arith.addf %9, %11 : vector<8x32xf32>
    %13 = math.tanh %12 : vector<8x32xf32>
    %c0_8 = arith.constant 0 : index
    %c0_9 = arith.constant 0 : index
    %14 = vector.load %arg5[%c0_8, %c0_9] : memref<8x32xf32, #tpu.memory_space<vmem>>, vector<8x32xf32>
    tpu.vector_store %arg5[%c0_8, %c0_9], %13 {strides = array<i32>} : memref<8x32xf32, #tpu.memory_space<vmem>>, vector<8x32xf32>,
    return
  }
  func.func @transform_0(%arg0: i32) -> (i32, i32) {
    %c0_i32 = arith.constant 0 : i32
    %c0_i32_0 = arith.constant 0 : i32
    return %arg0, %c0_i32 : i32, i32
  }
  func.func @transform_1(%arg0: i32) -> (i32, i32) {
    %c0_i32 = arith.constant 0 : i32
    %c0_i32_0 = arith.constant 0 : i32
    %c0_i32_1 = arith.constant 0 : i32
    return %c0_i32, %c0_i32_0 : i32, i32
  }
  func.func @transform_2(%arg0: i32) -> (i32, i32) {
    %c0_i32 = arith.constant 0 : i32
    %c0_i32_0 = arith.constant 0 : i32
    %c0_i32_1 = arith.constant 0 : i32
    return %c0_i32, %c0_i32_0 : i32, i32
  }
  func.func @transform_3(%arg0: i32) -> (i32, i32) {
    %c0_i32 = arith.constant 0 : i32
    %c0_i32_0 = arith.constant 0 : i32
    %c0_i32_1 = arith.constant 0 : i32
    return %c0_i32, %c0_i32_0 : i32, i32
  }
  func.func @transform_4(%arg0: i32) -> (i32, i32) {
    %c0_i32 = arith.constant 0 : i32
    %c0_i32_0 = arith.constant 0 : i32
    return %arg0, %c0_i32 : i32, i32
  }
}

</mosaic_0001>

<bundles_post_ra>
// kernel: _forward.1
= control target key start
LH: loop header
LB: loop body
LE: loop exit
PB: predicated region body
PF: predicated region fallthrough
CT: control target
= control target key end

     0   :  { %9 = vsyncpa [#allocation3], 0  ;;  %s516_s0 = inlined_call_operand.vmem [shape: f32[2,128], index: 0, kind: input, shape index: {}]   ;;  %s517_s1 = inlined_call_operand.hbm [shape: bf16[128,256], index: 1, kind: input, shape index: {}]   ;;  %s518_s2 = inlined_call_operand.vmem [shape: bf16[128,32], index: 2, kind: input, shape index: {}]   ;;  %s519_s3 = inlined_call_operand.vmem [shape: f32[1,32], index: 3, kind: input, shape index: {}]   ;;  %s520_s4 = inlined_call_operand.hbm [shape: f32[2,32], index: 4, kind: output, shape index: {}]  }
   0x1   :  { %10 = vsyncpa [#allocation4], 0  ;;  %s446_s15 = smov [#allocation2]  }
   0x2   :  { %s18_s16 = sshll.u32 %s446_s15, 4  ;;  %s19_s16 = int_to_ptr.vmem [resolvable:$true] %s18_s16 }
   0x3   :  { %s410_s17 = scalar_lea.vmem %s19_s16, 2048  ;;  %p415_p1 = scmp.lt.s32.totalorder %s19_s16, %s19_s16 }
   0x4   :  { %p411_p0 = scmp.ne.s32.totalorder %s19_s16, %s410_s17  ;;  %p416_p2 = scmp.lt.s32.totalorder %s410_s17, %s410_s17 }
   0x6   :  { %p417_p3 = por %p416_p2, %p415_p1 }
   0x8   :  { %p418_p4 = pnand %p417_p3, %p411_p0 }
   0xa   :  { %421 = shalt.err (!%p418_p4)
}
   0xb   :  { %s447_s18 = smov 128   ;;  %s448_s19 = smov 8  }
   0xc   :  { %24 = dma.hbm_to_vmem [thread:$0]  %s517_s1, 2048, %s19_s16, [#allocation3], %s447_s18, %s447_s18, %s448_s19  }
   0xd   :  { %442 = dma.done.wait [#allocation3], 2048  }
   0xe   :  { %443 = vsyncadd [#allocation3], 4294965248  ;;  %v449_v0 = vmov 0   ;;  %v450_v1 = vmov 0.0   ;;  %v368_v2 = vld [vmem:[#allocation2 + $0x74] ss:$8 sps:$4 sm:$0xff]  }
   0xf   :  { %163 = vmatprep.mubr.bf16.mxu0 %v449_v0  ;;  %339 = vmatprep.subr.bf16.mxu1 %v450_v1  ;;  %v370_v3 = vld [vmem:[#allocation2 + $0x70] ss:$8 sps:$4 sm:$0xff]   ;;  %v371_v4 = vld [vmem:[#allocation2 + $0x64] ss:$8 sps:$4 sm:$0xff]   ;;  %v373_v5 = vld [vmem:[#allocation2 + $0x60] ss:$8 sps:$4 sm:$0xff]  }
  0x10   :  { %131 = vmatprep.subr.bf16.mxu0 %v368_v2  ;;  %v374_v6 = vld [vmem:[#allocation2 + $0x54] ss:$8 sps:$4 sm:$0xff]   ;;  %v376_v7 = vld [vmem:[#allocation2 + $0x50] ss:$8 sps:$4 sm:$0xff]   ;;  %v377_v8 = vld [vmem:[#allocation2 + $0x44] ss:$8 sps:$4 sm:$0xff]  }
  0x11   :  { %132 = vmatpush1.bf16.msra.mxu0 %v370_v3  ;;  %v379_v9 = vld [vmem:[#allocation2 + $0x40] ss:$8 sps:$4 sm:$0xff]   ;;  %v392_v10 = vld [vmem:[%s518_s2 + $0x38] sm:$0xff]   ;;  %v393_v12 = vld [vmem:[%s518_s2 + $0x30] sm:$0xff]   ;;  %vm451_vm0 = vmmov 0   ;;  %vm286_vm1 = vcmask 261120  }
  0x12   :  { %133 = vmatprep.subr.bf16.mxu0 %v371_v4  ;;  %v380_v11 = vld [vmem:[#allocation2 + $0x34] ss:$8 sps:$4 sm:$0xff]   ;;  %340 = vmatpush3.bf16.msra.mxu1 %v392_v10  ;;  %v382_v13 = vld [vmem:[#allocation2 + $0x30] ss:$8 sps:$4 sm:$0xff]   ;;  %v383_v14 = vld [vmem:[#allocation2 + $0x24] ss:$8 sps:$4 sm:$0xff]  }
  0x13   :  { %341 = vmatprep.subr.bf16.mxu1 %v450_v1  ;;  %v394_v15 = vld [vmem:[%s518_s2 + $0x28] sm:$0xff]   ;;  %v386_v17 = vld [vmem:[#allocation2 + $0x14] ss:$8 sps:$4 sm:$0xff]   ;;  %v395_v18 = vld [vmem:[%s518_s2 + $0x20] sm:$0xff]   ;;  %355 = vmatprep.mubr.msk.bf16.mxu1 %vm451_vm0, %v450_v1 }
  0x14   :  { %v385_v16 = vld [vmem:[#allocation2 + $0x20] ss:$8 sps:$4 sm:$0xff]   ;;  %v388_v19 = vld [vmem:[#allocation2 + $0x10] ss:$8 sps:$4 sm:$0xff]   ;;  %v389_v20 = vld [vmem:[#allocation2 + $0x4] ss:$8 sps:$4 sm:$0xff]  }
  0x15   :  { %134 = vmatpush1.bf16.msra.mxu0 %v373_v5  ;;  %v396_v21 = vld [vmem:[%s518_s2 + $0x18] sm:$0xff]   ;;  %v391_v22 = vld [vmem:[#allocation2] ss:$8 sps:$4 sm:$0xff]   ;;  %v397_v24 = vld [vmem:[%s518_s2 + $0x10] sm:$0xff]  }
  0x16   :  { %135 = vmatprep.subr.bf16.mxu0 %v374_v6  ;;  %342 = vmatpush3.bf16.msra.mxu1 %v393_v12  ;;  %v33_v23 = vld [vmem:[%s516_s0] sm:$0xff]  ;;  %v398_v26 = vld [vmem:[%s518_s2 + $0x8] sm:$0xff]  }
  0x17   :  { %343 = vmatprep.subr.bf16.mxu1 %v450_v1  ;;  %v34_v25 = vpack.c.bf16 %v33_v23, %v33_v23  ;;  %v399_v27 = vld [vmem:[%s518_s2] sm:$0xff]  }
  0x18   :  { %v321_v34 = vld [vmem:[%s519_s3] ss:$0 sm:$0xff] }
  0x19   :  { %136 = vmatpush1.bf16.msra.mxu0 %v376_v7 }
  0x1a   :  { %137 = vmatprep.subr.bf16.mxu0 %v377_v8  ;;  %344 = vmatpush3.bf16.msra.mxu1 %v394_v15 }
  0x1b   :  { %345 = vmatprep.subr.bf16.mxu1 %v450_v1 }
  0x1d   :  { %138 = vmatpush1.bf16.msra.mxu0 %v379_v9 }
  0x1e   :  { %139 = vmatprep.subr.bf16.mxu0 %v380_v11  ;;  %346 = vmatpush3.bf16.msra.mxu1 %v395_v18 }
  0x1f   :  { %347 = vmatprep.subr.bf16.mxu1 %v450_v1 }
  0x21   :  { %140 = vmatpush1.bf16.msra.mxu0 %v382_v13 }
  0x22   :  { %141 = vmatprep.subr.bf16.mxu0 %v383_v14  ;;  %348 = vmatpush3.bf16.msra.mxu1 %v396_v21 }
  0x23   :  { %349 = vmatprep.subr.bf16.mxu1 %v450_v1 }
  0x25   :  { %142 = vmatpush1.bf16.msra.mxu0 %v385_v16 }
  0x26   :  { %143 = vmatprep.subr.bf16.mxu0 %v386_v17  ;;  %350 = vmatpush3.bf16.msra.mxu1 %v397_v24 }
  0x27   :  { %351 = vmatprep.subr.bf16.mxu1 %v450_v1 }
  0x29   :  { %144 = vmatpush1.bf16.msra.mxu0 %v388_v19 }
  0x2a   :  { %145 = vmatprep.subr.bf16.mxu0 %v389_v20  ;;  %352 = vmatpush3.bf16.msra.mxu1 %v398_v26 }
  0x2b   :  { %353 = vmatprep.subr.bf16.mxu1 %v450_v1 }
  0x2d   :  { %146 = vmatpush1.bf16.msra.mxu0 %v391_v22 }
  0x2e   :  { %354 = vmatpush3.bf16.msra.mxu1 %v399_v27 }
  0x30   :  { %164 = vmatmul.mubr.bf16.vlgmr.msra.gmra.mxu0 %v34_v25 }
  0xf0   :  { %v165_v28 = vpop.f32.mrf.mxu0 }
  0xf2   :  { %v167_v29 = vpop.f32.mrf.mxu0 }
  0xf3   :  { %v172_v30 = vmax.f32 %v165_v28, %v167_v29 }
  0xf4   :  { %v169_v31 = vpop.f32.mrf.mxu0 }
  0xf5   :  { %v173_v32 = vpack.c.bf16 %v172_v30, %v172_v30 }
  0xf6   :  { %v170_v33 = vpop.f32.mrf.mxu0 }
  0xf7   :  { %356 = vmatmul.mubr.bf16.vlgmr.msra.gmra.mxu1 %v173_v32 }
 0x1b7   :  { %v279_v35 = vpop.f32.mrf.mxu1 }
 0x1b8   :  { %v280_v36 = vadd.f32 %v321_v34, %v279_v35 }
 0x1b9   :  { %v357_v37 = vpop.f32.mrf.mxu1 }
 0x1ba   :  { %400 = vtanh.f32 %v280_v36 }
 0x1bb   :  { %v282_v38 = vpop.f32.mrf.mxu1 }
 0x1bd   :  { %v358_v39 = vpop.f32.mrf.mxu1 }
 0x1c7   :  { %v401_v40 = vpop.eup %400 }
 0x1c8   :  { %287 = vst.msk [vmem:[#allocation5] sm:$0xff] %vm286_vm1, %v401_v40 }
 0x1c9   :  { %292 = vsyncadd [#allocation4], 96  ;;  %s452_s2 = smov [#allocation5]  }
 0x1ca   :  { %s293_s14 = sshll.u32 %s452_s2, 4  ;;  %s294_s14 = int_to_ptr.vmem [resolvable:$true] %s293_s14 }
 0x1cb   :  { %s422_s15 = scalar_lea.vmem %s294_s14, 32  ;;  %s426_s16 = scalar_lea.vmem %s294_s14, 128 }
 0x1cc   :  { %p423_p5 = scmp.ne.s32.totalorder %s294_s14, %s422_s15  ;;  %p427_p6 = scmp.lt.s32.totalorder %s294_s14, %s294_s14 }
 0x1cd   :  { %p428_p7 = scmp.lt.s32.totalorder %s426_s16, %s422_s15 }
 0x1cf   :  { %p429_p8 = por %p428_p7, %p427_p6 }
 0x1d1   :  { %p430_p9 = pnand %p429_p8, %p423_p5 }
 0x1d3   :  { %433 = shalt.err (!%p430_p9)
}
 0x1d4   :  { %s453_s3 = smov 32   ;;  %s454_s17 = smov 2  }
 0x1d5   :  { %299 = dma.vmem_to_hbm [thread:$0]  %s294_s14, 32, %s520_s4, [#allocation4], %s453_s3, %s453_s3, %s454_s17  }
 0x1d6   :  { %444 = dma.done.wait [#allocation4], 128  }
 0x1d7   :  { %445 = vsyncadd [#allocation4], 4294967168 }
 0x1d8   :  { %303 = vsyncpa [#allocation3], 1 }
 0x1d9   :  { %304 = vsyncpa [#allocation4], 1 }

</bundles_post_ra>
